<compile_context>
chip_gen: v7x
topology: tpu7x:2x2x1
jax: 0.10.0
libtpu: 0.0.40
codegen_flags: <defaults>
</compile_context>

<pallas_src>
import functools

import jax
import jax.numpy as jnp
from jax.experimental import pallas as pl
from jax.experimental.pallas import tpu as pltpu


def _round_up(n, m):
    return ((n + m - 1) // m) * m


# Conservative budget for keeping the whole weight stack resident in VMEM:
# leaves room for x/out double buffers + activation scratch inside v7x's
# 64 MiB physical VMEM (tightest generation).
_RESIDENT_WEIGHT_BUDGET = 24 << 20


# ----------------------------------------------------------------------------
# Kernel: one grid step = (batch tile, layer).  Activation kept in VMEM scratch.
# ----------------------------------------------------------------------------
def _encoder_kernel(x_ref, w_ref, b_ref, o_ref, act_ref, *, resident_w, w_dtype):
    layer = pl.program_id(1)

    @pl.when(layer == 0)
    def _():
        # Load the (padded) input batch tile into the resident activation.
        act_ref[...] = x_ref[...].astype(jnp.float32)

    # Select this layer's weight / bias.
    w = w_ref[layer] if resident_w else w_ref[0]   # [D_pad, D_pad]
    b = b_ref[layer].astype(jnp.float32)           # [1, D_pad] (resident stack)

    a = act_ref[...]
    if jnp.dtype(w_dtype) != jnp.dtype(jnp.float32):
        a = a.astype(w_dtype)                      # bf16 operands -> fast MXU
    # y = relu(act @ W_l + b_l) with f32 accumulation on the MXU; bias/ReLU in
    # f32 on the VPU (v5e-safe).
    y = jnp.dot(a, w, preferred_element_type=jnp.float32)
    act_ref[...] = jnp.maximum(y + b, 0.0)

    @pl.when(layer == pl.num_programs(1) - 1)
    def _():
        o_ref[...] = act_ref[...].astype(o_ref.dtype)


def _fused_encoder_call(x_pad, w_stack, b_stack, tm, *, force_streamed=False):
    B_pad, D_pad = x_pad.shape
    L = w_stack.shape[0]
    grid = (B_pad // tm, L)
    w_itemsize = jnp.dtype(w_stack.dtype).itemsize

    resident_w = (not force_streamed and
                  L * D_pad * D_pad * w_itemsize <= _RESIDENT_WEIGHT_BUDGET)

    if resident_w:
        # Whole stack loaded once; single buffer (constant block index).
        w_spec = pl.BlockSpec((L, D_pad, D_pad), lambda b, l: (0, 0, 0),
                              pipeline_mode=pl.Buffered(1))
        w_buf_bytes = L * D_pad * D_pad * w_itemsize
        w_traffic = L * D_pad * D_pad * w_itemsize
    else:
        # Fallback: stream one layer's weights at a time (double-buffered
        # behind the current matmul over the "arbitrary" layer axis).
        w_spec = pl.BlockSpec((1, D_pad, D_pad), lambda b, l: (l, 0, 0))
        w_buf_bytes = 2 * D_pad * D_pad * w_itemsize
        w_traffic = (B_pad // tm) * L * D_pad * D_pad * w_itemsize

    # Biases are tiny -> always resident, loaded once.
    b_spec = pl.BlockSpec((L, 1, D_pad), lambda b, l: (0, 0, 0),
                          pipeline_mode=pl.Buffered(1))

    # Explicit VMEM budget: x (2 bufs) + out (2 bufs) + act scratch + weights
    # + bias (sublane-padded), with headroom; capped at v7x's 64 MiB physical.
    vmem_est = (5 * tm * D_pad * 4            # 2x x + 2x out + act scratch (f32)
                + w_buf_bytes
                + L * 8 * D_pad * 4)          # resident bias (padded to 8 sublanes)
    vmem_limit = min(int(vmem_est * 1.3) + (4 << 20), 64 << 20)

    cost = pl.CostEstimate(
        flops=2 * B_pad * D_pad * D_pad * L,
        transcendentals=0,
        bytes_accessed=(2 * B_pad * D_pad * 4     # x in + out
                        + w_traffic
                        + L * D_pad * 4),         # bias
    )

    kernel = functools.partial(_encoder_kernel,
                               resident_w=resident_w,
                               w_dtype=jnp.dtype(w_stack.dtype))

    return pl.pallas_call(
        kernel,
        out_shape=jax.ShapeDtypeStruct((B_pad, D_pad), x_pad.dtype),
        grid_spec=pltpu.PrefetchScalarGridSpec(
            num_scalar_prefetch=0,
            grid=grid,
            in_specs=[
                # activation input: one batch tile, lane-dense feature dim
                pl.BlockSpec((tm, D_pad), lambda b, l: (b, 0)),
                w_spec,
                b_spec,
            ],
            out_specs=pl.BlockSpec((tm, D_pad), lambda b, l: (b, 0)),
            scratch_shapes=[pltpu.VMEM((tm, D_pad), jnp.float32)],
        ),
        compiler_params=pltpu.CompilerParams(
            dimension_semantics=("parallel", "arbitrary"),
            vmem_limit_bytes=vmem_limit,
        ),
        cost_estimate=cost,
    )(x_pad, w_stack, b_stack)


# ----------------------------------------------------------------------------
# Parameter handling (PyTorch nn.Linear layout: weight [out, in], bias [out])
# ----------------------------------------------------------------------------
def init_encoder_params(key, input_dim, hidden_dim, num_fc_layers):
    """Deterministic init mimicking nn.Linear default U(-1/sqrt(fan_in), +)."""
    params = []
    for i in range(num_fc_layers):
        d_in = input_dim if i == 0 else hidden_dim
        d_out = hidden_dim
        key, kw, kb = jax.random.split(key, 3)
        bound = 1.0 / float(d_in) ** 0.5
        w = jax.random.uniform(kw, (d_out, d_in), jnp.float32, -bound, bound)
        b = jax.random.uniform(kb, (d_out,), jnp.float32, -bound, bound)
        params.append((w, b))
    return params


def pack_encoder_params(params, input_dim, hidden_dim, weight_dtype=jnp.bfloat16):
    """Stack + zero-pad all layers to a common [L, D_pad, D_pad] weight slab.

    Weights default to bf16 (f32 accumulation in-kernel); bias stays f32 since
    the bias add / ReLU run on the VPU in f32.  Zero padding is exact: padded
    weight rows/cols and bias lanes are zero, so padded activation lanes stay
    exactly 0 through every ReLU layer.
    """
    L = len(params)
    d_pad = _round_up(max(input_dim, hidden_dim), 128)
    w_stack = jnp.zeros((L, d_pad, d_pad), jnp.float32)
    b_stack = jnp.zeros((L, 1, d_pad), jnp.float32)
    for i, (w, b) in enumerate(params):
        d_out, d_in = w.shape
        # kernel computes x @ W, so store the transposed [in, out] weight
        w_stack = w_stack.at[i, :d_in, :d_out].set(w.T)
        b_stack = b_stack.at[i, 0, :d_out].set(b)
    return w_stack.astype(weight_dtype), b_stack


@functools.partial(jax.jit, static_argnames=("out_dim", "force_streamed"))
def encoder_forward(x, w_stack, b_stack, out_dim, force_streamed=False):
    B, d_in = x.shape
    d_pad = w_stack.shape[-1]

    if B <= 8:
        tm = 8
    else:
        # Produce >= 2 batch tiles whenever B_pad >= 16 (keeps both v7x
        # TensorCores busy on the "parallel" axis), capped at 256 to fill the
        # 256-wide MXU on v6e/v7x.
        tm = min(256, _round_up((B + 1) // 2, 8))
    b_pad = _round_up(max(B, 1), tm)

    x_pad = jnp.zeros((b_pad, d_pad), x.dtype).at[:B, :d_in].set(x)
    out_pad = _fused_encoder_call(x_pad, w_stack, b_stack, tm,
                                  force_streamed=force_streamed)
    return out_pad[:B, :out_dim]


def encoder_reference(x, params):
    for w, b in params:
        x = jnp.maximum(x @ w.T + b, 0.0)
    return x


# ----------------------------------------------------------------------------
if __name__ == "__main__":
    key = jax.random.PRNGKey(0)
    batch = 8
    input_dim = 16
    hidden_dim = 32
    num_fc_layers = 3

    key, kx = jax.random.split(key)
    x = jax.random.normal(kx, (batch, input_dim), jnp.float32)

    params = init_encoder_params(key, input_dim, hidden_dim, num_fc_layers)
    ref = encoder_reference(x, params)

    # 1) f32 weights, VMEM-resident weight stack: bit-accurate check.
    w32, b32 = pack_encoder_params(params, input_dim, hidden_dim,
                                   weight_dtype=jnp.float32)
    out32 = jax.block_until_ready(encoder_forward(x, w32, b32, hidden_dim))
    assert out32.shape == (batch, hidden_dim)
    assert jnp.allclose(out32, ref, atol=1e-5, rtol=1e-5), (
        f"f32 max abs err {jnp.max(jnp.abs(out32 - ref))}")

    # 2) bf16 weights (MXU fast path, f32 accumulation): bf16-level tolerance.
    wbf, bbf = pack_encoder_params(params, input_dim, hidden_dim,
                                   weight_dtype=jnp.bfloat16)
    outbf = jax.block_until_ready(encoder_forward(x, wbf, bbf, hidden_dim))
    assert outbf.shape == (batch, hidden_dim)
    assert jnp.allclose(outbf, ref, atol=5e-2, rtol=5e-2), (
        f"bf16 max abs err {jnp.max(jnp.abs(outbf - ref))}")

    # 3) exercise the streamed-weights fallback path (used when the stack
    #    exceeds the residency budget).
    outs = jax.block_until_ready(
        encoder_forward(x, w32, b32, hidden_dim, force_streamed=True))
    assert jnp.allclose(outs, ref, atol=1e-5, rtol=1e-5), (
        f"streamed max abs err {jnp.max(jnp.abs(outs - ref))}")

    print("KERNEL_OK")
</pallas_src>

<mosaic_0001>
module attributes {stable_mosaic.version = 11 : i64} {
  func.func @_encoder_kernel(%arg0: i32, %arg1: i32, %arg2: memref<8x128xf32, #tpu.memory_space<vmem>>, %arg3: memref<3x128x128xf32, #tpu.memory_space<vmem>>, %arg4: memref<3x1x128xf32, #tpu.memory_space<vmem>>, %arg5: memref<8x128xf32, #tpu.memory_space<vmem>>, %arg6: memref<8x128xf32, #tpu.memory_space<vmem>>) attributes {dimension_semantics = [#tpu.dimension_semantics<parallel>, #tpu.dimension_semantics<arbitrary>], iteration_bounds = array<i64: 1, 3>, scalar_prefetch = 0 : i64, scratch_operands = 1 : i64, tpu.core_type = #tpu.core_type<tc>, window_params = [{transform_indices = @transform_0, window_bounds = array<i64: 8, 128>}, {pipeline_mode = #tpu.pipeline_mode<synchronous>, transform_indices = @transform_1, window_bounds = array<i64: 3, 128, 128>}, {pipeline_mode = #tpu.pipeline_mode<synchronous>, transform_indices = @transform_2, window_bounds = array<i64: 3, 1, 128>}, {transform_indices = @transform_3, window_bounds = array<i64: 8, 128>}]} {
    %c0_i32 = arith.constant 0 : i32
    %0 = arith.cmpi eq, %arg1, %c0_i32 : i32
    %1 = arith.extui %0 : i1 to i32
    %c0_i32_0 = arith.constant 0 : i32
    %2 = arith.cmpi ne, %1, %c0_i32_0 : i32
    scf.if %2 {
      %c0_10 = arith.constant 0 : index
      %c0_11 = arith.constant 0 : index
      %19 = vector.load %arg2[%c0_10, %c0_11] : memref<8x128xf32, #tpu.memory_space<vmem>>, vector<8x128xf32>
      %c0_12 = arith.constant 0 : index
      %c0_13 = arith.constant 0 : index
      %20 = vector.load %arg6[%c0_12, %c0_13] : memref<8x128xf32, #tpu.memory_space<vmem>>, vector<8x128xf32>
      tpu.vector_store %arg6[%c0_12, %c0_13], %19 {strides = array<i32>} : memref<8x128xf32, #tpu.memory_space<vmem>>, vector<8x128xf32>,
    } else {
    }
    %3 = arith.index_cast %arg1 : i32 to index
    %c0 = arith.constant 0 : index
    %c0_1 = arith.constant 0 : index
    %4 = vector.load %arg3[%3, %c0, %c0_1] : memref<3x128x128xf32, #tpu.memory_space<vmem>>, vector<1x128x128xf32>
    %5 = vector.shape_cast %4 : vector<1x128x128xf32> to vector<128x128xf32>
    %6 = arith.index_cast %arg1 : i32 to index
    %c0_2 = arith.constant 0 : index
    %c0_3 = arith.constant 0 : index
    %7 = vector.load %arg4[%6, %c0_2, %c0_3] : memref<3x1x128xf32, #tpu.memory_space<vmem>>, vector<1x1x128xf32>
    %8 = vector.shape_cast %7 : vector<1x1x128xf32> to vector<1x128xf32>
    %c0_4 = arith.constant 0 : index
    %c0_5 = arith.constant 0 : index
    %9 = vector.load %arg6[%c0_4, %c0_5] : memref<8x128xf32, #tpu.memory_space<vmem>>, vector<8x128xf32>
    %cst = arith.constant dense<0.000000e+00> : vector<8x128xf32>
    %10 = tpu.matmul %9, %5, %cst {dimension_numbers = #tpu.dot_dimension_numbers<[1], [0], [0], [1], [0, 0, 1, 1], [], []>} : vector<8x128xf32>, vector<128x128xf32>, vector<8x128xf32> -> vector<8x128xf32>
    %11 = vector.broadcast %8 : vector<1x128xf32> to vector<8x128xf32>
    %12 = arith.addf %10, %11 : vector<8x128xf32>
    %cst_6 = arith.constant 0.000000e+00 : f32
    %13 = vector.broadcast %cst_6 : f32 to vector<8x128xf32>
    %14 = arith.maximumf %12, %13 : vector<8x128xf32>
    %c0_7 = arith.constant 0 : index
    %c0_8 = arith.constant 0 : index
    %15 = vector.load %arg6[%c0_7, %c0_8] : memref<8x128xf32, #tpu.memory_space<vmem>>, vector<8x128xf32>
    tpu.vector_store %arg6[%c0_7, %c0_8], %14 {strides = array<i32>} : memref<8x128xf32, #tpu.memory_space<vmem>>, vector<8x128xf32>,
    %c2_i32 = arith.constant 2 : i32
    %16 = arith.cmpi eq, %arg1, %c2_i32 : i32
    %17 = arith.extui %16 : i1 to i32
    %c0_i32_9 = arith.constant 0 : i32
    %18 = arith.cmpi ne, %17, %c0_i32_9 : i32
    scf.if %18 {
      %c0_10 = arith.constant 0 : index
      %c0_11 = arith.constant 0 : index
      %19 = vector.load %arg6[%c0_10, %c0_11] : memref<8x128xf32, #tpu.memory_space<vmem>>, vector<8x128xf32>
      %c0_12 = arith.constant 0 : index
      %c0_13 = arith.constant 0 : index
      %20 = vector.load %arg5[%c0_12, %c0_13] : memref<8x128xf32, #tpu.memory_space<vmem>>, vector<8x128xf32>
      tpu.vector_store %arg5[%c0_12, %c0_13], %19 {strides = array<i32>} : memref<8x128xf32, #tpu.memory_space<vmem>>, vector<8x128xf32>,
    } else {
    }
    return
  }
  func.func @transform_0(%arg0: i32, %arg1: i32) -> (i32, i32) {
    %c0_i32 = arith.constant 0 : i32
    %c0_i32_0 = arith.constant 0 : i32
    return %arg0, %c0_i32 : i32, i32
  }
  func.func @transform_1(%arg0: i32, %arg1: i32) -> (i32, i32, i32) {
    %c0_i32 = arith.constant 0 : i32
    %c0_i32_0 = arith.constant 0 : i32
    %c0_i32_1 = arith.constant 0 : i32
    %c0_i32_2 = arith.constant 0 : i32
    return %c0_i32, %c0_i32_0, %c0_i32_1 : i32, i32, i32
  }
  func.func @transform_2(%arg0: i32, %arg1: i32) -> (i32, i32, i32) {
    %c0_i32 = arith.constant 0 : i32
    %c0_i32_0 = arith.constant 0 : i32
    %c0_i32_1 = arith.constant 0 : i32
    %c0_i32_2 = arith.constant 0 : i32
    return %c0_i32, %c0_i32_0, %c0_i32_1 : i32, i32, i32
  }
  func.func @transform_3(%arg0: i32, %arg1: i32) -> (i32, i32) {
    %c0_i32 = arith.constant 0 : i32
    %c0_i32_0 = arith.constant 0 : i32
    return %arg0, %c0_i32 : i32, i32
  }
}

</mosaic_0001>

<bundles_post_ra>
// kernel: encoder_forward.1
= control target key start
LH: loop header
LB: loop body
LE: loop exit
PB: predicated region body
PF: predicated region fallthrough
CT: control target
= control target key end

     0   :  { %8 = vsyncpa [#allocation4], 0  ;;  %s750_s0 = inlined_call_operand.vmem [shape: f32[8,128], index: 0, kind: input, shape index: {}]   ;;  %s751_s1 = inlined_call_operand.hbm [shape: f32[3,128,128], index: 1, kind: input, shape index: {}]   ;;  %s752_s2 = inlined_call_operand.vmem [shape: f32[3,1,128], index: 2, kind: input, shape index: {}]   ;;  %s753_s3 = inlined_call_operand.hbm [shape: f32[8,128], index: 3, kind: output, shape index: {}]  }
   0x1   :  { %9 = vsyncpa [#allocation5], 0  ;;  %s624_s12 = smov 0   ;;  %s626_s13 = smov 0  }
   0x2   :  { %s628_s14 = smov 0  }
   0x3 LB: > { %s374_s15 = sadd.s32 4294967295, %s595_s14   ;;  %s24_s16 = sadd.s32 1, %s591_s13  ;;  %s595_s14 = sphi %s628_s14, %s15_s14   ;;  %s591_s13 = sphi %s626_s13, %s764_s13   ;;  %s587_s12 = sphi %s624_s12, %s763_s12  }
   0x4   : > { %p25_p0 = scmp.ge.s32.totalorder %s24_s16, 3  ;;  %p375_p1 = scmp.ge.s32.totalorder %s595_s14, 1 }
   0x5   : > { %p126_p2 = scmp.lt.s32.totalorder %s595_s14, 4  ;;  %p651_p4 = scmp.eq.s32.totalorder %s374_s15, 0 }
   0x6   : > { %s766_s16 = smov (%p25_p0, %s24_s16), 0  ;;  %s597_s19 = smov [#allocation3]  }
   0x7   : > { %p645_p3 = pnand %p375_p1, %p126_p2  ;;  %s145_s20 = sshll.u32 %s597_s19, 4  ;;  %s146_s20 = int_to_ptr.vmem [resolvable:$true] %s145_s20 }
   0x8   : > { %s758_s18 = scalar_select %p651_p4, 1, 0 }
   0x9   : > { %s757_s17 = scalar_select %p645_p3, 1, 0 }
   0xa   : > { %p472_p5 = pneg %p645_p3  ;;  %s511_s24 = scalar_lea.hbm %s751_s1, 6144 }
   0xb   : > { %p512_p7 = scmp.ne.s32.totalorder %s751_s1, %s511_s24  ;;  %p518_p11 = scmp.lt.u32.totalorder %s511_s24, %s751_s1 }
   0xc   : > { %p659_p6 = pnand %p651_p4, %p472_p5 }
   0xe   : > { %p513_p8 = pneg %p659_p6 }
  0x10   : > { %p514_p9 = pnand %p513_p8, %p512_p7 }
  0x12   : > { %p515_p10 = pneg %p514_p9 }
  0x14   : > { %p520_p12 = pnand %p518_p11, %p515_p10 }
  0x16   : > { %523 = shalt.err (!%p520_p12)
}
  0x17   : > { %s524_s29 = scalar_lea.vmem %s146_s20, 6144  ;;  %p532_p2 = scmp.lt.s32.totalorder %s146_s20, %s146_s20 }
  0x18   : > { %p525_p13 = scmp.ne.s32.totalorder %s146_s20, %s524_s29  ;;  %p533_p5 = scmp.lt.s32.totalorder %s524_s29, %s524_s29 }
  0x1a   : > { %p527_p0 = pnand %p525_p13, %p513_p8  ;;  %p534_p4 = por %p533_p5, %p532_p2 }
  0x1c   : > { %p528_p1 = pneg %p527_p0 }
  0x1e   : > { %p535_p3 = pnand %p534_p4, %p528_p1 }
  0x20   : > { %538 = shalt.err (!%p535_p3)
}
  0x21   : > { %s598_s30 = smov 128   ;;  %s599_s4 = smov 8  }
  0x22   : > { %475 = dma.hbm_to_vmem [thread:$0]  (!%p659_p6), %s751_s1, 6144, %s146_s20, [#allocation4], %s598_s30, %s598_s30, %s599_s4  }
  0x23   : > { %p760_p7 = scmp.ne.s32.totalorder %s757_s17, 0 }
  0x24   : > { %p761_p9 = scmp.ne.s32.totalorder (!%p760_p7), %s758_s18, 0 }
  0x25   : > { %164 = sbr.rel (%p760_p7) target bundleno = 340 (0x154), region = 32 }
  0x2c   : > { %578 = dma.done.wait (%p761_p9), [#allocation4], 6144  }
  0x2d   : > { %580 = vsyncadd (%p761_p9), [#allocation4], 4294961152  ;;  %p380_p4 = scmp.ne.s32.totalorder %s587_s12, 0 }
  0x2e   : > { %v190_v0 = vld [vmem:[%s750_s0] sm:$0xff] (!%p380_p4) }
  0x2f   : > { %189 = sbr.rel (%p380_p4) target bundleno = 54 (0x36), region = 40  ;;  %191 = vst [vmem:[#allocation2] sm:$0xff] (!%p380_p4), %v190_v0 }
  0x36 PF: > { %s381_s9 = sshll.u32 %s587_s12, 7  ;;  %v600_v1 = vmov 0.0|0.0   ;;  %vm601_vm0 = vmmov 0   ;;  %v602_v2 = vmov 0.0   ;;  %v212_v27 = vld [vmem:[#allocation2] sm:$0xff]  ;;  %s210_s18 = scalar_lea.vmem %s752_s2, %s587_s12 }
  0x37   : > { %440 = vmatprep.subr.bf16.mxu0 %v600_v1  ;;  %437 = vmatprep.mubr.msk.f32.mxu0 %vm601_vm0, %v602_v2  ;;  %s690_s10 = scalar_lea.vmem [#allocation3], %s381_s9  ;;  %v382_v28 = vld [vmem:[%s210_s18] ss:$0 sm:$0xff]  ;;  %p383_p3 = scmp.ne.s32.totalorder %s587_s12, 2 }
  0x38   : > { %v194_v3 = vld [vmem:[%s690_s10] sm:$0xff]  ;;  %v195_v4 = vld [vmem:[%s690_s10 + $0x8] sm:$0xff]  ;;  %v196_v5 = vld [vmem:[%s690_s10 + $0x10] sm:$0xff] }
  0x39   : > { %v441_v6 = vpack.c.bf16 %v195_v4, %v194_v3  ;;  %v197_v7 = vld [vmem:[%s690_s10 + $0x18] sm:$0xff]  ;;  %v198_v9 = vld [vmem:[%s690_s10 + $0x20] sm:$0xff]  ;;  %v199_v10 = vld [vmem:[%s690_s10 + $0x28] sm:$0xff] }
  0x3a   : > { %v444_v8 = vpack.c.bf16 %v197_v7, %v196_v5  ;;  %v447_v11 = vpack.c.bf16 %v199_v10, %v198_v9  ;;  %v200_v12 = vld [vmem:[%s690_s10 + $0x30] sm:$0xff]  ;;  %v201_v13 = vld [vmem:[%s690_s10 + $0x38] sm:$0xff]  ;;  %v202_v15 = vld [vmem:[%s690_s10 + $0x40] sm:$0xff] }
  0x3b   : > { %442 = vmatpush3.bf16.msra.mxu0 %v441_v6  ;;  %v450_v14 = vpack.c.bf16 %v201_v13, %v200_v12  ;;  %v203_v16 = vld [vmem:[%s690_s10 + $0x48] sm:$0xff]  ;;  %v204_v18 = vld [vmem:[%s690_s10 + $0x50] sm:$0xff]  ;;  %v205_v19 = vld [vmem:[%s690_s10 + $0x58] sm:$0xff] }
  0x3c   : > { %443 = vmatprep.subr.bf16.mxu0 %v600_v1  ;;  %v453_v17 = vpack.c.bf16 %v203_v16, %v202_v15  ;;  %v456_v20 = vpack.c.bf16 %v205_v19, %v204_v18  ;;  %v206_v21 = vld [vmem:[%s690_s10 + $0x60] sm:$0xff]  ;;  %v207_v22 = vld [vmem:[%s690_s10 + $0x68] sm:$0xff]  ;;  %v208_v24 = vld [vmem:[%s690_s10 + $0x70] sm:$0xff] }
  0x3d   : > { %v459_v23 = vpack.c.bf16 %v207_v22, %v206_v21  ;;  %v209_v25 = vld [vmem:[%s690_s10 + $0x78] sm:$0xff] }
  0x3e   : > { %v462_v26 = vpack.c.bf16 %v209_v25, %v208_v24 }
  0x3f   : > { %445 = vmatpush3.bf16.msra.mxu0 %v444_v8 }
  0x40   : > { %446 = vmatprep.subr.bf16.mxu0 %v600_v1 }
  0x43   : > { %448 = vmatpush3.bf16.msra.mxu0 %v447_v11 }
  0x44   : > { %449 = vmatprep.subr.bf16.mxu0 %v600_v1 }
  0x47   : > { %451 = vmatpush3.bf16.msra.mxu0 %v450_v14 }
  0x48   : > { %452 = vmatprep.subr.bf16.mxu0 %v600_v1 }
  0x4b   : > { %454 = vmatpush3.bf16.msra.mxu0 %v453_v17 }
  0x4c   : > { %455 = vmatprep.subr.bf16.mxu0 %v600_v1 }
  0x4f   : > { %457 = vmatpush3.bf16.msra.mxu0 %v456_v20 }
  0x50   : > { %458 = vmatprep.subr.bf16.mxu0 %v600_v1 }
  0x53   : > { %460 = vmatpush3.bf16.msra.mxu0 %v459_v23 }
  0x54   : > { %461 = vmatprep.subr.bf16.mxu0 %v600_v1 }
  0x57   : > { %463 = vmatpush3.bf16.msra.mxu0 %v462_v26 }
  0x5a   : > { %438 = vmatmul.mubr.f32.vlgmr.msra.gmra.mrb[0].mxu0 %v212_v27 }
 0x12c   : > { %294 = sbr.rel (%p383_p3) target bundleno = 315 (0x13b), region = 44 }
 0x12d   : > { %v285_v29 = vpop.f32.mrb[0].mxu0 }
 0x12e   : > { %v286_v30 = vadd.f32 %v382_v28, %v285_v29  ;;  %v439_v31 = vpop.f32.mrb[1].mxu0 }
 0x130   : > { %v289_v32 = vmax.f32 %v286_v30, 0.0 }
 0x132   : > { %290 = vst [vmem:[#allocation2] sm:$0xff] %v289_v32 }
 0x139   : > { %v295_v33 = vld [vmem:[#allocation2] sm:$0xff] }
 0x13a   : > { %296 = vst [vmem:[#allocation6] sm:$0xff] %v295_v33 }
 0x13b PF: > { %p715_p6 = scmp.eq.s32.totalorder %s374_s15, 2  ;;  %s603_s20 = smov [#allocation6]  }
 0x13c   : > { %s306_s21 = sshll.u32 %s603_s20, 4  ;;  %s307_s21 = int_to_ptr.vmem [resolvable:$true] %s306_s21 }
 0x13d   : > { %s539_s22 = scalar_lea.vmem %s307_s21, 128  ;;  %p546_p12 = scmp.lt.s32.totalorder %s307_s21, %s307_s21 }
 0x13e   : > { %p540_p8 = scmp.ne.s32.totalorder %s307_s21, %s539_s22  ;;  %p547_p13 = scmp.lt.s32.totalorder %s539_s22, %s539_s22 }
 0x140   : > { %p541_p10 = pnand %p540_p8, %p715_p6  ;;  %p548_p0 = por %p547_p13, %p546_p12 }
 0x142   : > { %p542_p11 = pneg %p541_p10 }
 0x144   : > { %p549_p1 = pnand %p548_p0, %p542_p11 }
 0x146   : > { %552 = shalt.err (!%p549_p1)
}
 0x147   : > { %s553_s15 = scalar_lea.hbm %s753_s3, 128 }
 0x148   : > { %p554_p2 = scmp.ne.s32.totalorder %s753_s3, %s553_s15  ;;  %p559_p9 = scmp.lt.u32.totalorder %s553_s15, %s753_s3 }
 0x14a   : > { %p555_p5 = pnand %p554_p2, %p715_p6 }
 0x14c   : > { %p556_p7 = pneg %p555_p5 }
 0x14e   : > { %p561_p4 = pnand %p559_p9, %p556_p7 }
 0x150   : > { %564 = shalt.err (!%p561_p4)
}
 0x151   : > { %469 = dma.vmem_to_hbm [thread:$0]  (%p715_p6), %s307_s21, 128, %s753_s3, [#allocation5]  }
 0x152   : > { %582 = dma.done.wait (%p715_p6), [#allocation5], 128  }
 0x153   : > { %584 = vsyncadd (%p715_p6), [#allocation5], 4294967168 }
 0x154 PF: > { %s15_s14 = sadd.s32 1, %s595_s14   ;;  %s763_s12 = smov %s591_s13 }
 0x155   : > { %p12_p3 = scmp.ge.s32.totalorder %s15_s14, 5   ;;  %s764_s13 = smov %s766_s16 }
 0x157   :  { %14 = sbr.rel (!%p12_p3) target bundleno = 3 (0x3), region = 75 }
 0x15e   :  { %319 = vsyncpa [#allocation4], 1 }
 0x15f   :  { %321 = vsyncpa [#allocation4 + $0x1], 1 }
 0x160   :  { %322 = vsyncpa [#allocation5], 1 }
 0x161   :  { %324 = vsyncpa [#allocation5 + $0x1], 1 }

</bundles_post_ra>
